<compile_context>
chip_gen: v6e
topology: v6e:2x2x1
jax: 0.10.0
libtpu: 0.0.40
codegen_flags: <defaults>
</compile_context>

<pallas_src>
import jax
import jax.numpy as jnp
from jax.experimental import pallas as pl
from jax.experimental.pallas import tpu as pltpu


# ----------------------------------------------------------------------------- kernel

def _fusion_kernel(x_ref, wt_ref, b_ref, o_ref):
    # x_ref : (TN, C, HW)  batch tile, spatial dims flattened, native dtype
    # wt_ref: (C, C)       pre-transposed Linear weight (in_features, out_features), x dtype
    # b_ref : (1, C)       Linear bias, f32
    # o_ref : (TN, HW)     channel-weighted sum (channel keepdim handled in wrapper)
    x = x_ref[...]                                             # native dtype; no wholesale f32 cast
    inv_hw = jnp.float32(1.0 / x_ref.shape[2])

    # Phase 1: global average pool over the flattened-spatial (lane) axis.
    # f32 accumulation; the f32 view of x is transient (dies at this reduce) and is
    # budgeted in _pick_tn.  (If HW is not a multiple of 128 the logical reduce is
    # masked by the compiler since the block covers the full HW extent.)
    z = jnp.sum(x, axis=2, dtype=jnp.float32) * inv_hw         # (TN, C) f32

    # Gate: sigmoid(z @ W.T + b).  Matmul in the weight's (x) dtype on the MXU,
    # f32 accumulation via preferred_element_type; bias added in f32.
    y = jnp.dot(z.astype(wt_ref.dtype), wt_ref[...],
                preferred_element_type=jnp.float32) + b_ref[...]   # (TN, C) f32
    g = jax.nn.sigmoid(y)                                      # (TN, C) f32

    # Phase 2: channel-weighted sum.  Multiply in the input dtype (bf16 VPU on
    # v6e/v7x: half the VALU ops / vreg footprint), accumulate the cross-sublane
    # reduce over C in f32.  x is reused in its native dtype — no tile-sized f32
    # copy survives across phases.
    prod = x * g.astype(x.dtype)[:, :, None]                   # (TN, C, HW) native dtype
    out = jnp.sum(prod, axis=1, dtype=jnp.float32)             # (TN, HW) f32
    o_ref[...] = out.astype(o_ref.dtype)


# ------------------------------------------------------------------------ tile sizing

def _round_up(v, m):
    return ((v + m - 1) // m) * m


def _per_core_vmem_bytes():
    """Per-TensorCore VMEM capacity, by generation (64 MiB on v7x, 128 MiB on v5e/v6e)."""
    try:
        kind = jax.devices()[0].device_kind.lower()
    except Exception:
        kind = ""
    if "v7" in kind:
        return 64 << 20
    if any(t in kind for t in ("v5 lite", "v5e", "v6", "trillium")):
        return 128 << 20
    try:
        cap = int(pltpu.get_tpu_info().vmem_capacity_bytes)
        return max(32 << 20, min(cap, 128 << 20))
    except Exception:
        return 64 << 20   # conservative default


def _pick_tn(n, c, hw, x_item, out_item, vmem_budget):
    """Pick TN (multiple of the sublane packing of both dtypes) with an honest VMEM
    footprint: padded C/HW, double-buffered x/out pipeline copies, double-buffered
    grid-invariant weight/bias blocks, and the transient in-kernel f32 working set."""
    sub_x = max(8, 32 // x_item)           # sublane packing: 8 f32, 16 bf16, 32 int8
    sub_o = max(8, 32 // out_item)
    sub = max(sub_x, sub_o)

    c_pad = _round_up(c, sub_x)            # sublane-padded channel extent inside a tile
    hw_pad = _round_up(hw, 128)            # lane-padded flattened spatial extent
    c_lpad = _round_up(c, 128)

    w_bytes = 2 * c_pad * c_lpad * x_item  # weight, double-buffered (grid-invariant)
    b_bytes = 2 * 8 * c_lpad * 4           # bias (1, C) f32, double-buffered

    def footprint(tn):
        tile_x = tn * c_pad * hw_pad * x_item        # one pipelined x buffer
        tile_f32 = tn * c_pad * hw_pad * 4           # transient f32 reduce/product view
        out_tile = tn * hw_pad * out_item
        working = tile_f32 + (tile_x if x_item < 4 else 0) + tn * hw_pad * 4
        return 2 * tile_x + 2 * out_tile + working + w_bytes + b_bytes

    n_cap = max(sub, _round_up(n, sub))    # never exceed the padded batch
    tn = sub
    while tn * 2 <= n_cap and footprint(tn * 2) <= vmem_budget:
        tn *= 2                            # no artificial 32-row cap (review item)

    # Prefer >= 4 grid steps when the batch allows it (2-TC load balance on v7x).
    while tn > sub and n >= 4 * sub and pl.cdiv(n, tn) < 4:
        tn //= 2

    # Bound batch-padding waste to ~12.5% of N (padded rows are pure wasted HBM reads).
    while tn > sub and (pl.cdiv(n, tn) * tn - n) * 8 > n:
        tn //= 2
    return tn


# --------------------------------------------------------------------------- wrapper

def fusion_layer(x_nchw, weight, bias):
    """x_nchw: (N, C, H, W); weight: (C, C) torch layout (out, in); bias: (C,)."""
    N, C, H, W = x_nchw.shape
    assert H == W, "FusionLayer's AvgPool2d(size(2)) assumes square spatial input"
    HW = H * W

    # x stays in its HBM dtype (bf16 stays bf16); accumulation is done in f32 in-kernel.
    x = x_nchw.reshape(N, C, HW)
    x_item = jnp.dtype(x.dtype).itemsize
    out_item = x_item                                   # output stored in the input dtype

    per_tc_vmem = _per_core_vmem_bytes()
    vmem_limit = int(min(per_tc_vmem * 3 // 4, per_tc_vmem - (8 << 20)))
    vmem_limit = max(vmem_limit, 32 << 20)
    vmem_budget = (vmem_limit * 85) // 100

    tn = _pick_tn(N, C, HW, x_item, out_item, vmem_budget)
    n_pad = pl.cdiv(N, tn) * tn
    if n_pad != N:
        x = jnp.pad(x, ((0, n_pad - N), (0, 0), (0, 0)))

    # Weight kept in x's dtype (bf16 weight when x is bf16 -> native MXU path, half the
    # VMEM/DMA); pre-transposed so the kernel does z @ W_t directly.  Bias stays f32.
    wt = weight.T.astype(x.dtype)                       # (C_in, C_out)
    b2 = bias.reshape(1, C).astype(jnp.float32)

    grid = (n_pad // tn,)
    cost = pl.CostEstimate(
        flops=3 * n_pad * C * HW + 2 * n_pad * C * C,
        transcendentals=n_pad * C,
        bytes_accessed=(n_pad * C * HW * x_item        # read x
                        + n_pad * HW * out_item        # write out
                        + C * C * x_item + C * 4),     # weight + bias
    )

    out = pl.pallas_call(
        _fusion_kernel,
        out_shape=jax.ShapeDtypeStruct((n_pad, HW), x.dtype),
        grid_spec=pltpu.PrefetchScalarGridSpec(
            num_scalar_prefetch=0,
            grid=grid,
            in_specs=[
                pl.BlockSpec((tn, C, HW), lambda n: (n, 0, 0)),   # x tile (TN batch rows)
                pl.BlockSpec((C, C), lambda n: (0, 0)),           # weight (grid-invariant)
                pl.BlockSpec((1, C), lambda n: (0, 0)),           # bias   (grid-invariant)
            ],
            out_specs=pl.BlockSpec((tn, HW), lambda n: (n, 0)),   # lane+sublane dense
        ),
        compiler_params=pltpu.CompilerParams(
            dimension_semantics=("parallel",),
            vmem_limit_bytes=vmem_limit,
        ),
        cost_estimate=cost,
    )(x, wt, b2)

    return out[:N].reshape(N, 1, H, W)


# -------------------------------------------------------------------------- reference

def _reference(x_nchw, weight, bias):
    # pure-JAX reference matching the PyTorch forward
    z = jnp.mean(x_nchw.astype(jnp.float32), axis=(2, 3))     # (N, C)
    g = jax.nn.sigmoid(z @ weight.T + bias)                   # (N, C)
    g = g[:, :, None, None]                                   # (N, C, 1, 1)
    return jnp.sum(x_nchw.astype(jnp.float32) * g, axis=1, keepdims=True)


if __name__ == "__main__":
    key = jax.random.PRNGKey(0)
    k_x, k_w, k_b = jax.random.split(key, 3)

    N, C, H, W = 2, 4, 16, 16                                 # small synthetic shapes
    x = jax.random.normal(k_x, (N, C, H, W), dtype=jnp.float32)

    # deterministic Linear(channels, channels) params (torch layout: (out, in))
    bound = 1.0 / (C ** 0.5)
    weight = jax.random.uniform(k_w, (C, C), minval=-bound, maxval=bound,
                                dtype=jnp.float32)
    bias = jax.random.uniform(k_b, (C,), minval=-bound, maxval=bound,
                              dtype=jnp.float32)

    out = fusion_layer(x, weight, bias)
    out = jax.block_until_ready(out)

    ref = _reference(x, weight, bias)
    assert out.shape == (N, 1, H, W)
    # Note: for bf16 inputs the output is stored in bf16 (bandwidth); tolerances
    # would need loosening there.  The f32 test keeps 1e-5.
    assert jnp.allclose(out, ref.astype(out.dtype), atol=1e-5, rtol=1e-5), \
        "mismatch vs reference"

    print("KERNEL_OK")
</pallas_src>

<mosaic_0001>
module attributes {stable_mosaic.version = 11 : i64} {
  func.func @_fusion_kernel(%arg0: i32, %arg1: memref<8x4x256xf32, #tpu.memory_space<vmem>>, %arg2: memref<4x4xf32, #tpu.memory_space<vmem>>, %arg3: memref<1x4xf32, #tpu.memory_space<vmem>>, %arg4: memref<8x256xf32, #tpu.memory_space<vmem>>) attributes {dimension_semantics = [#tpu.dimension_semantics<parallel>], iteration_bounds = array<i64: 1>, scalar_prefetch = 0 : i64, scratch_operands = 0 : i64, tpu.core_type = #tpu.core_type<tc>, window_params = [{transform_indices = @transform_0, window_bounds = array<i64: 8, 4, 256>}, {pipeline_mode = #tpu.pipeline_mode<synchronous>, transform_indices = @transform_1, window_bounds = array<i64: 4, 4>}, {pipeline_mode = #tpu.pipeline_mode<synchronous>, transform_indices = @transform_2, window_bounds = array<i64: 1, 4>}, {transform_indices = @transform_3, window_bounds = array<i64: 8, 256>}]} {
    %c0 = arith.constant 0 : index
    %c0_0 = arith.constant 0 : index
    %c0_1 = arith.constant 0 : index
    %0 = vector.load %arg1[%c0, %c0_0, %c0_1] : memref<8x4x256xf32, #tpu.memory_space<vmem>>, vector<8x4x256xf32>
    %cst = arith.constant dense<0.000000e+00> : vector<8x4xf32>
    %1 = vector.multi_reduction <add>, %0, %cst [2] : vector<8x4x256xf32> to vector<8x4xf32>
    %cst_2 = arith.constant 3.906250e-03 : f32
    %2 = vector.broadcast %cst_2 : f32 to vector<8x4xf32>
    %3 = arith.mulf %1, %2 : vector<8x4xf32>
    %c0_3 = arith.constant 0 : index
    %c0_4 = arith.constant 0 : index
    %4 = vector.load %arg2[%c0_3, %c0_4] : memref<4x4xf32, #tpu.memory_space<vmem>>, vector<4x4xf32>
    %cst_5 = arith.constant dense<0.000000e+00> : vector<8x4xf32>
    %5 = tpu.matmul %3, %4, %cst_5 {dimension_numbers = #tpu.dot_dimension_numbers<[1], [0], [0], [1], [0, 0, 1, 1], [], []>} : vector<8x4xf32>, vector<4x4xf32>, vector<8x4xf32> -> vector<8x4xf32>
    %c0_6 = arith.constant 0 : index
    %c0_7 = arith.constant 0 : index
    %6 = vector.load %arg3[%c0_6, %c0_7] : memref<1x4xf32, #tpu.memory_space<vmem>>, vector<1x4xf32>
    %7 = vector.broadcast %6 : vector<1x4xf32> to vector<8x4xf32>
    %8 = arith.addf %5, %7 : vector<8x4xf32>
    %9 = arith.negf %8 : vector<8x4xf32>
    %10 = math.exp %9 : vector<8x4xf32>
    %cst_8 = arith.constant 1.000000e+00 : f32
    %11 = vector.broadcast %cst_8 : f32 to vector<8x4xf32>
    %12 = arith.addf %11, %10 : vector<8x4xf32>
    %13 = arith.divf %11, %12 : vector<8x4xf32>
    %14 = vector.shape_cast %13 : vector<8x4xf32> to vector<8x4x1xf32>
    %15 = vector.broadcast %14 : vector<8x4x1xf32> to vector<8x4x256xf32>
    %16 = arith.mulf %0, %15 : vector<8x4x256xf32>
    %cst_9 = arith.constant dense<0.000000e+00> : vector<8x256xf32>
    %17 = vector.multi_reduction <add>, %16, %cst_9 [1] : vector<8x4x256xf32> to vector<8x256xf32>
    %c0_10 = arith.constant 0 : index
    %c0_11 = arith.constant 0 : index
    %18 = vector.load %arg4[%c0_10, %c0_11] : memref<8x256xf32, #tpu.memory_space<vmem>>, vector<8x256xf32>
    tpu.vector_store %arg4[%c0_10, %c0_11], %17 {strides = array<i32>} : memref<8x256xf32, #tpu.memory_space<vmem>>, vector<8x256xf32>,
    return
  }
  func.func @transform_0(%arg0: i32) -> (i32, i32, i32) {
    %c0_i32 = arith.constant 0 : i32
    %c0_i32_0 = arith.constant 0 : i32
    %c0_i32_1 = arith.constant 0 : i32
    return %arg0, %c0_i32, %c0_i32_0 : i32, i32, i32
  }
  func.func @transform_1(%arg0: i32) -> (i32, i32) {
    %c0_i32 = arith.constant 0 : i32
    %c0_i32_0 = arith.constant 0 : i32
    %c0_i32_1 = arith.constant 0 : i32
    return %c0_i32, %c0_i32_0 : i32, i32
  }
  func.func @transform_2(%arg0: i32) -> (i32, i32) {
    %c0_i32 = arith.constant 0 : i32
    %c0_i32_0 = arith.constant 0 : i32
    %c0_i32_1 = arith.constant 0 : i32
    return %c0_i32, %c0_i32_0 : i32, i32
  }
  func.func @transform_3(%arg0: i32) -> (i32, i32) {
    %c0_i32 = arith.constant 0 : i32
    %c0_i32_0 = arith.constant 0 : i32
    return %arg0, %c0_i32 : i32, i32
  }
}

</mosaic_0001>

<bundles_post_ra>
// kernel: tpu_custom_call.1
= control target key start
LH: loop header
LB: loop body
LE: loop exit
PB: predicated region body
PF: predicated region fallthrough
CT: control target
= control target key end

     0   :  { %8 = vsyncpa [#allocation3], 0  ;;  %s851_s0 = inlined_call_operand.hbm [shape: f32[8,4,256], index: 0, kind: input, shape index: {}]   ;;  %s852_s1 = inlined_call_operand.hbm [shape: f32[4,4], index: 1, kind: input, shape index: {}]   ;;  %s853_s2 = inlined_call_operand.vmem [shape: f32[1,4], index: 2, kind: input, shape index: {}]   ;;  %s854_s3 = inlined_call_operand.hbm [shape: f32[8,256], index: 3, kind: output, shape index: {}]  }
   0x1   :  { %9 = vsyncpa [#allocation6], 0 }
   0x2   :  { %10 = vsyncpa [#allocation4], 0  ;;  %s687_s12 = smov [#allocation2]  }
   0x3   :  { %s16_s13 = sshll.u32 %s687_s12, 4  ;;  %s17_s13 = int_to_ptr.vmem [resolvable:$true] %s16_s13 }
   0x4   :  { %s629_s14 = scalar_lea.vmem %s17_s13, 1024  ;;  %p634_p1 = scmp.lt.s32.totalorder %s17_s13, %s17_s13 }
   0x5   :  { %p630_p0 = scmp.ne.s32.totalorder %s17_s13, %s629_s14  ;;  %p635_p2 = scmp.lt.s32.totalorder %s629_s14, %s629_s14 }
   0x7   :  { %p636_p3 = por %p635_p2, %p634_p1 }
   0x9   :  { %p637_p4 = pnand %p636_p3, %p630_p0 }
   0xb   :  { %640 = shalt.err (!%p637_p4)
}
   0xc   :  { %s688_s15 = smov 128   ;;  %s689_s16 = smov 8  }
   0xd   :  { %22 = dma.hbm_to_vmem [thread:$0]  %s851_s0, 1024, %s17_s13, [#allocation3], %s688_s15, %s688_s15, %s689_s16  }
   0xe   :  { %s690_s19 = smov [#allocation5]  }
   0xf   :  { %s29_s20 = sshll.u32 %s690_s19, 4  ;;  %s30_s20 = int_to_ptr.vmem [resolvable:$true] %s29_s20 }
  0x10   :  { %s649_s21 = scalar_lea.vmem %s30_s20, 64  ;;  %p654_p6 = scmp.lt.s32.totalorder %s30_s20, %s30_s20 }
  0x11   :  { %p650_p5 = scmp.ne.s32.totalorder %s30_s20, %s649_s21  ;;  %p655_p7 = scmp.lt.s32.totalorder %s649_s21, %s649_s21 }
  0x13   :  { %p656_p8 = por %p655_p7, %p654_p6 }
  0x15   :  { %p657_p9 = pnand %p656_p8, %p650_p5 }
  0x17   :  { %660 = shalt.err (!%p657_p9)
}
  0x18   :  { %32 = dma.hbm_to_vmem [thread:$0]  %s852_s1, 64, %s30_s20, [#allocation6]  }
  0x19   :  { %681 = dma.done.wait [#allocation3], 1024  }
  0x1a   :  { %682 = vsyncadd [#allocation3], 4294966272 }
  0x1b   :  { %683 = dma.done.wait [#allocation6], 64  }
  0x1c   :  { %684 = vsyncadd [#allocation6], 4294967232  ;;  %vm73_vm0 = vcmask 1043456   ;;  %v721_v0 = vld [vmem:[#allocation2] sm:$0xff]  ;;  %v723_v1 = vld [vmem:[#allocation2 + $0x10] sm:$0xff]  ;;  %v691_v41 = vmov 0.0   ;;  %v138_v42 = vlaneseq }
  0x1d   :  { %v725_v2 = vld [vmem:[#allocation2 + $0x8] sm:$0xff]  ;;  %v57_v3 = vcombine.high %v721_v0, %v721_v0  ;;  %v74_v4 = vsel %vm73_vm0, %v721_v0, 0.0  ;;  %v59_v5 = vcombine.high %v723_v1, %v723_v1  ;;  %v84_v6 = vsel %vm73_vm0, %v723_v1, 0.0  ;;  %v735_v7 = vld [vmem:[#allocation2 + $0x18] sm:$0xff]  ;;  %v737_v8 = vld [vmem:[#allocation2 + $0x20] sm:$0xff]  ;;  %596 = vmatprep.subr.mxu0 %v691_v41 }
  0x1e   :  { %v58_v9 = vcombine.high %v725_v2, %v725_v2  ;;  %v79_v10 = vsel %vm73_vm0, %v725_v2, 0.0  ;;  %v60_v11 = vcombine.high %v735_v7, %v735_v7  ;;  %v745_v12 = vld [vmem:[#allocation2 + $0x28] sm:$0xff]  ;;  %v89_v15 = vsel %vm73_vm0, %v735_v7, 0.0  ;;  %v755_v21 = vld [vmem:[#allocation2 + $0x30] sm:$0xff]  ;;  %v757_v22 = vld [vmem:[#allocation2 + $0x38] sm:$0xff] }
  0x1f   :  { %v75_v13 = vsel %vm73_vm0, %v57_v3, 0.0  ;;  %v85_v14 = vsel %vm73_vm0, %v59_v5, 0.0  ;;  %v61_v16 = vcombine.high %v737_v8, %v737_v8  ;;  %v62_v23 = vcombine.high %v745_v12, %v745_v12  ;;  %v122_v40 = vld [vmem:[#allocation5] sm:$0xf] }
  0x20   :  { %v76_v17 = vadd.f32 %v75_v13, %v74_v4  ;;  %v86_v18 = vadd.f32 %v85_v14, %v84_v6  ;;  %v80_v19 = vsel %vm73_vm0, %v58_v9, 0.0  ;;  %v90_v20 = vsel %vm73_vm0, %v60_v11, 0.0  ;;  %597 = vmatpush3.msk.msra.mxu0 %vm73_vm0, %v122_v40 }
  0x21   :  { %v81_v24 = vadd.f32 %v80_v19, %v79_v10  ;;  %v91_v25 = vadd.f32 %v90_v20, %v89_v15  ;;  %v94_v26 = vsel %vm73_vm0, %v737_v8, 0.0  ;;  %v95_v27 = vsel %vm73_vm0, %v61_v16, 0.0  ;;  %v590_v19 = vld [vmem:[%s853_s2] ss:$0 sm:$0xff]  ;;  %s694_s2 = smov [#allocation7]  }
  0x22   :  { %77 = vadd.xlane.f32.xlu0 %v76_v17  ;;  %87 = vadd.xlane.f32.xlu1 %v86_v18  ;;  %v99_v28 = vsel %vm73_vm0, %v745_v12, 0.0  ;;  %v100_v29 = vsel %vm73_vm0, %v62_v23, 0.0  ;;  %v63_v30 = vcombine.high %v755_v21, %v755_v21  ;;  %v64_v31 = vcombine.high %v757_v22, %v757_v22  ;;  %s580_s24 = sshll.u32 %s694_s2, 4  ;;  %s581_s24 = int_to_ptr.vmem [resolvable:$true] %s580_s24 }
  0x23   :  { %v96_v32 = vadd.f32 %v95_v27, %v94_v26  ;;  %v101_v33 = vadd.f32 %v100_v29, %v99_v28  ;;  %v104_v34 = vsel %vm73_vm0, %v755_v21, 0.0  ;;  %v109_v36 = vsel %vm73_vm0, %v757_v22, 0.0  ;;  %s661_s25 = scalar_lea.vmem %s581_s24, 256  ;;  %p666_p11 = scmp.lt.s32.totalorder %s581_s24, %s581_s24 }
  0x24   :  { %v105_v35 = vsel %vm73_vm0, %v63_v30, 0.0  ;;  %v110_v37 = vsel %vm73_vm0, %v64_v31, 0.0  ;;  %vm692_vm1 = vmmov 0   ;;  %v139_v43 = vand.u32 127, %v138_v42  ;;  %p662_p10 = scmp.ne.s32.totalorder %s581_s24, %s661_s25  ;;  %p667_p12 = scmp.lt.s32.totalorder %s661_s25, %s661_s25 }
  0x25   :  { %v106_v38 = vadd.f32 %v105_v35, %v104_v34  ;;  %v111_v39 = vadd.f32 %v110_v37, %v109_v36  ;;  %598 = vmatprep.mubr.msk.f32.mxu0 %vm692_vm1, %v691_v41  ;;  %v778_v44 = vshrl.u32 %v138_v42, 7  ;;  %vm172_vm2 = vcmask 1041409  }
  0x26   :  { %82 = vadd.xlane.f32.xlu0 %v81_v24  ;;  %92 = vadd.xlane.f32.xlu1 %v91_v25  ;;  %vm174_vm3 = vcmask 1042434   ;;  %vm176_vm4 = vcmask 1043459   ;;  %vm178_vm5 = vcmask 1044484   ;;  %vm180_vm6 = vcmask 1045509   ;;  %p668_p13 = por %p667_p12, %p666_p11 }
  0x27   :  { %v142_v47 = vsub.s32 %v139_v43, %v778_v44  ;;  %vm182_vm7 = vcmask 1046534   ;;  %vm184_vm8 = vcmask 1047559   ;;  %vm186_vm9 = vcmask 31744  }
  0x28   :  { %v277_v28 = vsub.s32 1, %v778_v44  ;;  %v270_v29 = vsub.s32 0, %v778_v44  ;;  %v298_v34 = vsub.s32 4, %v778_v44  ;;  %v291_v37 = vsub.s32 3, %v778_v44  ;;  %p669_p0 = pnand %p668_p13, %p662_p10 }
  0x29   :  { %v305_v41 = vsub.s32 5, %v778_v44  ;;  %v319_v43 = vsub.s32 7, %v778_v44 }
  0x2a   :  { %97 = vadd.xlane.f32.xlu0 %v96_v32  ;;  %102 = vadd.xlane.f32.xlu1 %v101_v33  ;;  %v284_v33 = vsub.s32 2, %v778_v44 }
  0x2e   :  { %107 = vadd.xlane.f32.xlu0 %v106_v38  ;;  %112 = vadd.xlane.f32.xlu1 %v111_v39  ;;  %v312_v38 = vsub.s32 6, %v778_v44 }
  0xab   :  { %v78_v45 = vpop.xlane.xlu0 %77  ;;  %v88_v46 = vpop.xlane.xlu1 %87 }
  0xac   :  { %v114_v48 = vmul.f32 0.00390625, %v78_v45  ;;  %v116_v49 = vmul.f32 0.00390625, %v88_v46  ;;  %v693_v46 = vmov 839922192  }
  0xae   :  { %v143_v54 = vrot.slane %v114_v48, %v142_v47  ;;  %v151_v57 = vrot.slane %v116_v49, %v142_v47 }
  0xaf   :  { %v83_v50 = vpop.xlane.xlu0 %82  ;;  %v93_v51 = vpop.xlane.xlu1 %92 }
  0xb0   :  { %v115_v52 = vmul.f32 0.00390625, %v83_v50  ;;  %v117_v53 = vmul.f32 0.00390625, %v93_v51 }
  0xb2   :  { %v147_v55 = vrot.slane %v115_v52, %v142_v47  ;;  %v155_v56 = vrot.slane %v117_v53, %v142_v47 }
  0xb3   :  { %v98_v58 = vpop.xlane.xlu0 %97  ;;  %v103_v59 = vpop.xlane.xlu1 %102 }
  0xb4   :  { %v173_v60 = vsel %vm172_vm2, %v147_v55, %v143_v54  ;;  %v118_v61 = vmul.f32 0.00390625, %v98_v58  ;;  %v119_v62 = vmul.f32 0.00390625, %v103_v59 }
  0xb5   :  { %v175_v63 = vsel %vm174_vm3, %v151_v57, %v173_v60 }
  0xb6   :  { %v177_v3 = vsel %vm176_vm4, %v155_v56, %v175_v63  ;;  %v159_v4 = vrot.slane %v118_v61, %v142_v47  ;;  %v163_v5 = vrot.slane %v119_v62, %v142_v47 }
  0xb7   :  { %v108_v6 = vpop.xlane.xlu0 %107  ;;  %v113_v9 = vpop.xlane.xlu1 %112 }
  0xb8   :  { %v179_v10 = vsel %vm178_vm5, %v159_v4, %v177_v3  ;;  %v120_v11 = vmul.f32 0.00390625, %v108_v6  ;;  %v121_v13 = vmul.f32 0.00390625, %v113_v9 }
  0xb9   :  { %v181_v16 = vsel %vm180_vm6, %v163_v5, %v179_v10 }
  0xba   :  { %v167_v14 = vrot.slane %v120_v11, %v142_v47  ;;  %v171_v15 = vrot.slane %v121_v13, %v142_v47  ;;  %v333_v47 = vunpack.c.l.s4 %v693_v46 }
  0xbc   :  { %v183_v17 = vsel %vm182_vm7, %v167_v14, %v181_v16  ;;  %v334_v48 = vunpack.c.0.s8 %v333_v47 }
  0xbd   :  { %v185_v18 = vsel %vm184_vm8, %v171_v15, %v183_v17 }
  0xbe   :  { %599 = vmatmul.mubr.msk.f32.vlgmr.msra.gmra.mxu0 %vm186_vm9, %v185_v18  ;;  %v800_v49 = vsub.s32 %v334_v48, %v778_v44 }
 0x17e   :  { %v258_v20 = vpop.f32.mrf.mxu0 }
 0x17f   :  { %v259_v23 = vadd.f32 %v590_v19, %v258_v20 }
 0x180   :  { %v600_v24 = vpop.f32.mrf.mxu0 }
 0x181   :  { %v593_v25 = vmul.f32 -1.442695, %v259_v23 }
 0x183   :  { %617 = vpow2.f32 %v593_v25 }
 0x190   :  { %v618_v26 = vpop.eup %617 }
 0x191   :  { %v265_v27 = vadd.f32 1.0, %v618_v26 }
 0x193   :  { %619 = vrcp.f32 %v265_v27 }
 0x1a0   :  { %v620_v30 = vpop.eup %619 }
 0x1a1   :  { %v278_v31 = vrot.slane %v620_v30, %v277_v28  ;;  %v271_v32 = vrot.slane %v620_v30, %v270_v29  ;;  %v285_v35 = vrot.slane %v620_v30, %v284_v33  ;;  %v299_v36 = vrot.slane %v620_v30, %v298_v34 }
 0x1a2   :  { %v292_v39 = vrot.slane %v620_v30, %v291_v37  ;;  %v313_v40 = vrot.slane %v620_v30, %v312_v38  ;;  %v306_v42 = vrot.slane %v620_v30, %v305_v41  ;;  %v320_v45 = vrot.slane %v620_v30, %v319_v43 }
 0x1a3   :  { %280 = vbcast.lane.b32.xlu1 %v278_v31, 256  ;;  %273 = vbcast.lane.b32.xlu0 %v271_v32, 256 }
 0x1a7   :  { %287 = vbcast.lane.b32.xlu1 %v285_v35, 256  ;;  %301 = vbcast.lane.b32.xlu0 %v299_v36, 256 }
 0x1ab   :  { %294 = vbcast.lane.b32.xlu1 %v292_v39, 256  ;;  %315 = vbcast.lane.b32.xlu0 %v313_v40, 256 }
 0x1af   :  { %308 = vbcast.lane.b32.xlu1 %v306_v42, 256 }
 0x1b3   :  { %322 = vbcast.lane.b32.xlu1 %v320_v45, 256 }
 0x215   :  { %v281_v50 = vpop.permute.xlu1 %280  ;;  %v274_v51 = vpop.permute.xlu0 %273 }
 0x216   :  { %v345_v52 = vrot.slane %v281_v50, %v800_v49  ;;  %v338_v53 = vrot.slane %v274_v51, %v800_v49 }
 0x218   :  { %v397_v54 = vmul.f32 %v345_v52, %v725_v2  ;;  %v396_v55 = vmul.f32 %v338_v53, %v721_v0 }
 0x219   :  { %v288_v56 = vpop.permute.xlu1 %287  ;;  %v302_v57 = vpop.permute.xlu0 %301 }
 0x21a   :  { %v413_v58 = vcombine.high %v397_v54, %v397_v54  ;;  %v442_v59 = vsel %vm73_vm0, %v397_v54, 0.0  ;;  %v412_v60 = vcombine.high %v396_v55, %v396_v55  ;;  %v428_v61 = vsel %vm73_vm0, %v396_v55, 0.0 }
 0x21b   :  { %v443_v44 = vrot.slane %v442_v59, 4  ;;  %v429_v62 = vrot.slane %v428_v61, 4  ;;  %v352_v63 = vrot.slane %v288_v56, %v800_v49  ;;  %v366_v3 = vrot.slane %v302_v57, %v800_v49 }
 0x21c   :  { %v449_v4 = vsel %vm73_vm0, %v413_v58, 0.0  ;;  %v435_v2 = vsel %vm73_vm0, %v412_v60, 0.0 }
 0x21d   :  { %v444_v5 = vadd.f32 %v443_v44, %v442_v59  ;;  %v450_v0 = vrot.slane %v449_v4, 4  ;;  %v436_v6 = vrot.slane %v435_v2, 4  ;;  %v430_v9 = vadd.f32 %v429_v62, %v428_v61  ;;  %v295_v18 = vpop.permute.xlu1 %294  ;;  %v316_v24 = vpop.permute.xlu0 %315 }
 0x21e   :  { %v398_v10 = vmul.f32 %v352_v63, %v723_v1  ;;  %v400_v13 = vmul.f32 %v366_v3, %v737_v8  ;;  %v359_v27 = vrot.slane %v295_v18, %v800_v49  ;;  %v380_v30 = vrot.slane %v316_v24, %v800_v49 }
 0x21f   :  { %v445_v11 = vrot.slane %v444_v5, 2  ;;  %v451_v14 = vadd.f32 %v450_v0, %v449_v4  ;;  %v437_v15 = vadd.f32 %v436_v6, %v435_v2  ;;  %v431_v19 = vrot.slane %v430_v9, 2 }
 0x220   :  { %v414_v16 = vcombine.high %v398_v10, %v398_v10  ;;  %v456_v17 = vsel %vm73_vm0, %v398_v10, 0.0  ;;  %v416_v25 = vcombine.high %v400_v13, %v400_v13  ;;  %v484_v26 = vsel %vm73_vm0, %v400_v13, 0.0 }
 0x221   :  { %v457_v20 = vrot.slane %v456_v17, 4  ;;  %v446_v1 = vadd.f32 %v445_v11, %v444_v5  ;;  %v452_v28 = vrot.slane %v451_v14, 2  ;;  %v438_v29 = vrot.slane %v437_v15, 2  ;;  %v309_v36 = vpop.permute.xlu1 %308 }
 0x222   :  { %v463_v23 = vsel %vm73_vm0, %v414_v16, 0.0  ;;  %v432_v31 = vadd.f32 %v431_v19, %v430_v9  ;;  %v485_v33 = vrot.slane %v484_v26, 4  ;;  %v491_v34 = vsel %vm73_vm0, %v416_v25, 0.0 }
 0x223   :  { %v464_v8 = vrot.slane %v463_v23, 4  ;;  %v458_v32 = vadd.f32 %v457_v20, %v456_v17  ;;  %v399_v35 = vmul.f32 %v359_v27, %v735_v7  ;;  %v447_v37 = vrot.slane %v446_v1, 1 }
 0x224   :  { %v453_v38 = vadd.f32 %v452_v28, %v451_v14  ;;  %v439_v39 = vadd.f32 %v438_v29, %v437_v15  ;;  %v402_v43 = vmul.f32 %v380_v30, %v755_v21  ;;  %v433_v45 = vrot.slane %v432_v31, 1 }
 0x225   :  { %v465_v40 = vadd.f32 %v464_v8, %v463_v23  ;;  %v415_v41 = vcombine.high %v399_v35, %v399_v35  ;;  %v470_v42 = vsel %vm73_vm0, %v399_v35, 0.0  ;;  %v459_v46 = vrot.slane %v458_v32, 2  ;;  %v323_v21 = vpop.permute.xlu1 %322 }
 0x226   :  { %v486_v47 = vadd.f32 %v485_v33, %v484_v26  ;;  %v492_v48 = vrot.slane %v491_v34, 4  ;;  %v471_v50 = vrot.slane %v470_v42, 4  ;;  %v418_v52 = vcombine.high %v402_v43, %v402_v43 }
 0x227   :  { %v477_v51 = vsel %vm73_vm0, %v415_v41, 0.0  ;;  %v512_v7 = vsel %vm73_vm0, %v402_v43, 0.0  ;;  %v448_v53 = vadd.f32 %v447_v37, %v446_v1  ;;  %v454_v54 = vrot.slane %v453_v38, 1 }
 0x228   :  { %v440_v55 = vrot.slane %v439_v39, 1  ;;  %v466_v56 = vrot.slane %v465_v40, 2  ;;  %v472_v57 = vadd.f32 %v471_v50, %v470_v42  ;;  %v478_v58 = vrot.slane %v477_v51, 4 }
 0x229   :  { %v513_v59 = vrot.slane %v512_v7, 4  ;;  %v519_v60 = vsel %vm73_vm0, %v418_v52, 0.0  ;;  %v434_v61 = vadd.f32 %v433_v45, %v432_v31  ;;  %v487_v44 = vrot.slane %v486_v47, 2 }
 0x22a   :  { %v493_v62 = vadd.f32 %v492_v48, %v491_v34  ;;  %v520_v63 = vrot.slane %v519_v60, 4  ;;  %v460_v3 = vadd.f32 %v459_v46, %v458_v32  ;;  %v473_v4 = vrot.slane %v472_v57, 2 }
 0x22b   :  { %v479_v2 = vadd.f32 %v478_v58, %v477_v51  ;;  %v373_v5 = vrot.slane %v309_v36, %v800_v49  ;;  %v455_v0 = vadd.f32 %v454_v54, %v453_v38  ;;  %v441_v6 = vadd.f32 %v440_v55, %v439_v39 }
 0x22c   :  { %v514_v9 = vadd.f32 %v513_v59, %v512_v7  ;;  %v387_v10 = vrot.slane %v323_v21, %v800_v49  ;;  %v467_v11 = vadd.f32 %v466_v56, %v465_v40  ;;  %v474_v13 = vadd.f32 %v473_v4, %v472_v57 }
 0x22d   :  { %v480_v14 = vrot.slane %v479_v2, 2  ;;  %v401_v15 = vmul.f32 %v373_v5, %v745_v12  ;;  %v556_v16 = vsel %vm172_vm2, %v448_v53, %v434_v61  ;;  %v488_v17 = vadd.f32 %v487_v44, %v486_v47 }
 0x22e   :  { %v521_v18 = vadd.f32 %v520_v63, %v519_v60  ;;  %v403_v19 = vmul.f32 %v387_v10, %v757_v22  ;;  %v461_v20 = vrot.slane %v460_v3, 1  ;;  %v494_v23 = vrot.slane %v493_v62, 2 }
 0x22f   :  { %v481_v24 = vadd.f32 %v480_v14, %v479_v2  ;;  %v417_v25 = vcombine.high %v401_v15, %v401_v15  ;;  %v515_v26 = vrot.slane %v514_v9, 2  ;;  %v498_v27 = vsel %vm73_vm0, %v401_v15, 0.0 }
 0x230   :  { %v419_v1 = vcombine.high %v403_v19, %v403_v19  ;;  %v526_v49 = vsel %vm73_vm0, %v403_v19, 0.0  ;;  %v563_v28 = vsel %vm172_vm2, %v455_v0, %v441_v6  ;;  %v468_v29 = vrot.slane %v467_v11, 1 }
 0x231   :  { %v475_v12 = vrot.slane %v474_v13, 1  ;;  %v499_v8 = vrot.slane %v498_v27, 4  ;;  %v522_v30 = vrot.slane %v521_v18, 2  ;;  %v505_v31 = vsel %vm73_vm0, %v417_v25, 0.0 }
 0x232   :  { %v527_v32 = vrot.slane %v526_v49, 4  ;;  %v533_v22 = vsel %vm73_vm0, %v419_v1, 0.0  ;;  %v495_v33 = vadd.f32 %v494_v23, %v493_v62  ;;  %v482_v34 = vrot.slane %v481_v24, 1 }
 0x233   :  { %v500_v35 = vadd.f32 %v499_v8, %v498_v27  ;;  %v506_v36 = vrot.slane %v505_v31, 4  ;;  %v462_v37 = vadd.f32 %v461_v20, %v460_v3  ;;  %v516_v38 = vadd.f32 %v515_v26, %v514_v9 }
 0x234   :  { %v528_v39 = vadd.f32 %v527_v32, %v526_v49  ;;  %v534_v40 = vrot.slane %v533_v22, 4  ;;  %v489_v41 = vrot.slane %v488_v17, 1  ;;  %v476_v42 = vadd.f32 %v475_v12, %v474_v13 }
 0x235   :  { %v501_v43 = vrot.slane %v500_v35, 2  ;;  %v507_v45 = vadd.f32 %v506_v36, %v505_v31  ;;  %v469_v46 = vadd.f32 %v468_v29, %v467_v11  ;;  %v523_v47 = vadd.f32 %v522_v30, %v521_v18 }
 0x236   :  { %v529_v48 = vrot.slane %v528_v39, 2  ;;  %v535_v50 = vadd.f32 %v534_v40, %v533_v22  ;;  %v496_v51 = vrot.slane %v495_v33, 1  ;;  %v483_v52 = vadd.f32 %v482_v34, %v481_v24 }
 0x237   :  { %v502_v7 = vadd.f32 %v501_v43, %v500_v35  ;;  %v508_v53 = vrot.slane %v507_v45, 2  ;;  %v557_v54 = vsel %vm174_vm3, %v462_v37, %v556_v16  ;;  %v517_v55 = vrot.slane %v516_v38, 1 }
 0x238   :  { %v530_v56 = vadd.f32 %v529_v48, %v528_v39  ;;  %v536_v57 = vrot.slane %v535_v50, 2  ;;  %v490_v58 = vadd.f32 %v489_v41, %v488_v17  ;;  %v558_v21 = vsel %vm176_vm4, %v476_v42, %v557_v54 }
 0x239   :  { %v503_v59 = vrot.slane %v502_v7, 1  ;;  %v509_v60 = vadd.f32 %v508_v53, %v507_v45  ;;  %v524_v61 = vrot.slane %v523_v47, 1  ;;  %v564_v63 = vsel %vm174_vm3, %v469_v46, %v563_v28 }
 0x23a   :  { %v531_v44 = vrot.slane %v530_v56, 1  ;;  %v537_v62 = vadd.f32 %v536_v57, %v535_v50  ;;  %v497_v3 = vadd.f32 %v496_v51, %v495_v33  ;;  %v565_v5 = vsel %vm176_vm4, %v483_v52, %v564_v63 }
 0x23b   :  { %v504_v4 = vadd.f32 %v503_v59, %v502_v7  ;;  %v510_v2 = vrot.slane %v509_v60, 1  ;;  %v518_v0 = vadd.f32 %v517_v55, %v516_v38  ;;  %v559_v10 = vsel %vm178_vm5, %v490_v58, %v558_v21 }
 0x23c   :  { %v532_v6 = vadd.f32 %v531_v44, %v530_v56  ;;  %v538_v9 = vrot.slane %v537_v62, 1  ;;  %v525_v14 = vadd.f32 %v524_v61, %v523_v47  ;;  %v566_v17 = vsel %vm178_vm5, %v497_v3, %v565_v5 }
 0x23d   :  { %v511_v11 = vadd.f32 %v510_v2, %v509_v60  ;;  %v560_v13 = vsel %vm180_vm6, %v504_v4, %v559_v10 }
 0x23e   :  { %v539_v15 = vadd.f32 %v538_v9, %v537_v62  ;;  %v561_v16 = vsel %vm182_vm7, %v518_v0, %v560_v13 }
 0x23f   :  { %v562_v18 = vsel %vm184_vm8, %v532_v6, %v561_v16  ;;  %v567_v19 = vsel %vm180_vm6, %v511_v11, %v566_v17 }
 0x240   :  { %v568_v20 = vsel %vm182_vm7, %v525_v14, %v567_v19  ;;  %572 = vst [vmem:[#allocation7] sm:$0xff] %v562_v18 }
 0x241   :  { %v569_v23 = vsel %vm184_vm8, %v539_v15, %v568_v20 }
 0x242   :  { %573 = vst [vmem:[#allocation7 + $0x8] sm:$0xff] %v569_v23 }
 0x243   :  { %672 = shalt.err (!%p669_p0)
}
 0x244   :  { %583 = dma.vmem_to_hbm [thread:$0]  %s581_s24, 256, %s854_s3, [#allocation4]  }
 0x245   :  { %685 = dma.done.wait [#allocation4], 256  }
 0x246   :  { %686 = vsyncadd [#allocation4], 4294967040 }
 0x247   :  { %587 = vsyncpa [#allocation3], 1 }
 0x248   :  { %588 = vsyncpa [#allocation6], 1 }
 0x249   :  { %589 = vsyncpa [#allocation4], 1 }

</bundles_post_ra>
